<compile_context>
chip_gen: v7x
topology: tpu7x:2x2x1
jax: 0.10.0
libtpu: 0.0.40
codegen_flags: <defaults>
</compile_context>

<pallas_src>
import functools

import jax
import jax.numpy as jnp
from jax.experimental import pallas as pl
from jax.experimental.pallas import tpu as pltpu


def _round_up(a, m):
    return ((a + m - 1) // m) * m


def _monomials_kernel(x_ref, c_ref, b_ref, o_ref, *, degree):
    # x_ref: (TB, input_dim)
    # c_ref: (K=degree*input_dim, TN) f32, rows ordered [d=1 block, ..., d=degree]
    # b_ref: (1, TN)                  f32, degree-0 term folded into a bias row
    # o_ref: (TB, TN)
    x = jax.nn.sigmoid(x_ref[...].astype(jnp.float32))
    # Build x^1..x^degree along the lane axis, then one wide MXU matmul.
    powers = [x]
    p = x
    for _ in range(2, degree + 1):
        p = p * x
        powers.append(p)
    mono = powers[0] if degree == 1 else jnp.concatenate(powers, axis=-1)
    acc = jnp.dot(mono, c_ref[...], preferred_element_type=jnp.float32)
    o_ref[...] = (acc + b_ref[...]).astype(o_ref.dtype)


def prepare_monomial_coeffs(mono_coeffs, degree):
    """One-time parameter transform (do at model setup, not per forward call).

    mono_coeffs: (input_dim, output_dim, degree + 1)  -- torch Parameter layout.
    Returns:
      coeffs_2d: (degree*input_dim, n_pad) f32, columns zero-padded to a
                 multiple of 128 (lane-dense output stores are free wins).
      bias:      (1, n_pad) f32  == sum_i mono_coeffs[i, :, 0], zero-padded.
      output_dim: the true (unpadded) output width.
    """
    mono_coeffs = mono_coeffs.astype(jnp.float32)
    input_dim, output_dim, _ = mono_coeffs.shape
    bias = jnp.sum(mono_coeffs[:, :, 0], axis=0)[None, :]
    if degree >= 1:
        coeffs_2d = jnp.concatenate(
            [mono_coeffs[:, :, d] for d in range(1, degree + 1)], axis=0)
    else:
        coeffs_2d = jnp.zeros((0, output_dim), jnp.float32)
    n_pad = _round_up(output_dim, 128)
    if n_pad != output_dim:
        pad = n_pad - output_dim
        coeffs_2d = jnp.pad(coeffs_2d, ((0, 0), (0, pad)))
        bias = jnp.pad(bias, ((0, 0), (0, pad)))
    return coeffs_2d, bias, output_dim


def _physical_vmem_bytes():
    try:
        info = pltpu.get_tpu_info()
        vmem = getattr(info, "vmem_capacity_bytes", None)
        if vmem:
            return int(vmem)
    except Exception:
        pass
    return 64 * 1024 * 1024  # conservative default (v7x per-TC VMEM)


def _select_tiles(b_flat, input_dim, K, n_pad, x_bytes, out_bytes, budget):
    """Pick (tb, tn) tiles within a VMEM footprint budget."""
    # Sublane packing of the x input block depends on its dtype.
    pack = max(8, 32 // max(1, x_bytes))

    def footprint(tb, tn):
        # Double-buffered pipeline buffers + single-buffered f32 temporaries
        # (mono (tb,K) and acc (tb,tn)) the compiler materializes in VMEM.
        io = 2 * (tb * tn * out_bytes + K * tn * 4
                  + tb * input_dim * x_bytes + tn * 4)
        tmp = tb * (K + tn) * 4
        return io + tmp

    # Output tile: prefer full (padded) width so the coefficient block is
    # fetched once and stays resident across the whole batch sweep.
    tn = n_pad
    tb_probe = min(_round_up(max(b_flat, 1), pack), 256)
    if footprint(tb_probe, tn) > budget and n_pad > 128:
        tn = 2048
        while tn > 128 and footprint(1024, tn) > budget:
            tn //= 2
        tn = max(tn, 128)
    tn = min(tn, n_pad)

    # Batch tile: as large as fits, aiming for 1024-2048.
    tb = min(2048, _round_up(max(b_flat, 1), pack))
    while tb > pack and footprint(tb, tn) > budget:
        tb = max(pack, _round_up(tb // 2, pack))

    # Give both v7x TensorCores a block when the batch is big enough to care.
    if b_flat > 1024 and pl.cdiv(b_flat, tb) == 1 and pl.cdiv(n_pad, tn) == 1:
        tb = _round_up(pl.cdiv(b_flat, 2), pack)

    return tb, tn, footprint(tb, tn)


def monomials_forward(x, coeffs_2d, bias, output_dim, *, degree):
    """x: array whose last dim is input_dim (2D/3D/4D like the torch module).
    coeffs_2d / bias / output_dim: outputs of prepare_monomial_coeffs."""
    input_dim = x.shape[-1]
    n_pad = bias.shape[1]

    orig_lead = x.shape[:-1]
    x_flat = x.reshape(-1, input_dim)
    b_flat = x_flat.shape[0]

    if degree == 0:
        # Degenerate case: output is a constant per output feature.
        y_flat = jnp.broadcast_to(bias[:, :output_dim],
                                  (b_flat, output_dim)).astype(x.dtype)
        return y_flat.reshape(*orig_lead, output_dim)

    K = degree * input_dim
    assert coeffs_2d.shape == (K, n_pad)

    x_bytes = jnp.dtype(x.dtype).itemsize
    out_bytes = x_bytes

    phys_vmem = _physical_vmem_bytes()
    budget = phys_vmem // 2
    tb, tn, footprint = _select_tiles(
        b_flat, input_dim, K, n_pad, x_bytes, out_bytes, budget)

    vmem_limit = max(32 * 1024 * 1024,
                     min(phys_vmem - (8 << 20), footprint + (16 << 20)))

    # Grid ordered (out outer, batch inner): when the output is tiled, the
    # (K, tn) coefficient tile stays resident across the inner batch sweep and
    # only the small x tile re-streams.
    grid = (pl.cdiv(n_pad, tn), pl.cdiv(b_flat, tb))
    kernel = functools.partial(_monomials_kernel, degree=degree)

    cost = pl.CostEstimate(
        flops=2 * b_flat * K * n_pad,
        transcendentals=b_flat * input_dim,  # sigmoid exp
        bytes_accessed=(b_flat * input_dim * x_bytes
                        + K * n_pad * 4 + n_pad * 4
                        + b_flat * n_pad * out_bytes),
    )

    y_flat = pl.pallas_call(
        kernel,
        out_shape=jax.ShapeDtypeStruct((b_flat, n_pad), x.dtype),
        grid_spec=pltpu.PrefetchScalarGridSpec(
            num_scalar_prefetch=0,
            grid=grid,
            in_specs=[
                pl.BlockSpec((tb, input_dim), lambda j, i: (i, 0)),
                pl.BlockSpec((K, tn), lambda j, i: (0, j)),
                pl.BlockSpec((1, tn), lambda j, i: (0, j)),
            ],
            out_specs=pl.BlockSpec((tb, tn), lambda j, i: (i, j)),
        ),
        compiler_params=pltpu.CompilerParams(
            dimension_semantics=("parallel", "parallel"),
            vmem_limit_bytes=int(vmem_limit),
        ),
        cost_estimate=cost,
    )(x_flat, coeffs_2d, bias)

    if n_pad != output_dim:
        y_flat = y_flat[:, :output_dim]
    return y_flat.reshape(*orig_lead, output_dim)


def monomials_reference(x, mono_coeffs, *, degree):
    """Pure-JAX reference mirroring the torch forward, for correctness check."""
    input_dim, output_dim, _ = mono_coeffs.shape
    orig_shape = x.shape
    xf = jax.nn.sigmoid(x.reshape(-1, input_dim).astype(jnp.float32))
    mono = jnp.stack([xf ** d for d in range(degree + 1)], axis=-1)  # (B, I, D+1)
    y = jnp.einsum("bid,iod->bo", mono, mono_coeffs.astype(jnp.float32))
    return y.reshape(*orig_shape[:-1], output_dim).astype(x.dtype)


if __name__ == "__main__":
    input_dim, output_dim, degree = 16, 32, 3

    key = jax.random.PRNGKey(0)
    k_coef, k_x = jax.random.split(key)

    # deterministic init matching nn.init.normal_(std=1/(input_dim*(degree+1)))
    std = 1.0 / (input_dim * (degree + 1))
    mono_coeffs = std * jax.random.normal(
        k_coef, (input_dim, output_dim, degree + 1), dtype=jnp.float32)

    # 4D input, last dim == input_dim (e.g. (batch, channels, seq, input_dim))
    x = jax.random.normal(k_x, (2, 4, 8, input_dim), dtype=jnp.float32)

    # One-time parameter transform (would live at model setup).
    coeffs_2d, bias, out_dim = prepare_monomial_coeffs(mono_coeffs, degree)

    y = monomials_forward(x, coeffs_2d, bias, out_dim, degree=degree)
    y = jax.block_until_ready(y)

    y_ref = monomials_reference(x, mono_coeffs, degree=degree)
    assert y.shape == (2, 4, 8, output_dim), y.shape
    assert jnp.allclose(y, y_ref, atol=1e-5, rtol=1e-5), "mismatch vs reference"

    print("KERNEL_OK")
</pallas_src>

<mosaic_0001>
module attributes {stable_mosaic.version = 11 : i64} {
  func.func @_monomials_kernel(%arg0: i32, %arg1: i32, %arg2: memref<64x16xf32, #tpu.memory_space<vmem>>, %arg3: memref<48x128xf32, #tpu.memory_space<vmem>>, %arg4: memref<1x128xf32, #tpu.memory_space<vmem>>, %arg5: memref<64x128xf32, #tpu.memory_space<vmem>>) attributes {dimension_semantics = [#tpu.dimension_semantics<parallel>, #tpu.dimension_semantics<parallel>], iteration_bounds = array<i64: 1, 1>, scalar_prefetch = 0 : i64, scratch_operands = 0 : i64, tpu.core_type = #tpu.core_type<tc>, window_params = [{transform_indices = @transform_0, window_bounds = array<i64: 64, 16>}, {transform_indices = @transform_1, window_bounds = array<i64: 48, 128>}, {transform_indices = @transform_2, window_bounds = array<i64: 1, 128>}, {transform_indices = @transform_3, window_bounds = array<i64: 64, 128>}]} {
    %c0 = arith.constant 0 : index
    %c0_0 = arith.constant 0 : index
    %0 = vector.load %arg2[%c0, %c0_0] : memref<64x16xf32, #tpu.memory_space<vmem>>, vector<64x16xf32>
    %1 = arith.negf %0 : vector<64x16xf32>
    %2 = math.exp %1 : vector<64x16xf32>
    %cst = arith.constant 1.000000e+00 : f32
    %3 = vector.broadcast %cst : f32 to vector<64x16xf32>
    %4 = arith.addf %3, %2 : vector<64x16xf32>
    %5 = arith.divf %3, %4 : vector<64x16xf32>
    %6 = arith.mulf %5, %5 : vector<64x16xf32>
    %7 = arith.mulf %6, %5 : vector<64x16xf32>
    %8 = tpu.concatenate %5, %6, %7 in 1 : vector<64x16xf32>, vector<64x16xf32>, vector<64x16xf32> -> vector<64x48xf32>
    %c0_1 = arith.constant 0 : index
    %c0_2 = arith.constant 0 : index
    %9 = vector.load %arg3[%c0_1, %c0_2] : memref<48x128xf32, #tpu.memory_space<vmem>>, vector<48x128xf32>
    %cst_3 = arith.constant dense<0.000000e+00> : vector<64x128xf32>
    %10 = tpu.matmul %8, %9, %cst_3 {dimension_numbers = #tpu.dot_dimension_numbers<[1], [0], [0], [1], [0, 0, 1, 1], [], []>} : vector<64x48xf32>, vector<48x128xf32>, vector<64x128xf32> -> vector<64x128xf32>
    %c0_4 = arith.constant 0 : index
    %c0_5 = arith.constant 0 : index
    %11 = vector.load %arg4[%c0_4, %c0_5] : memref<1x128xf32, #tpu.memory_space<vmem>>, vector<1x128xf32>
    %12 = vector.broadcast %11 : vector<1x128xf32> to vector<64x128xf32>
    %13 = arith.addf %10, %12 : vector<64x128xf32>
    %c0_6 = arith.constant 0 : index
    %c0_7 = arith.constant 0 : index
    %14 = vector.load %arg5[%c0_6, %c0_7] : memref<64x128xf32, #tpu.memory_space<vmem>>, vector<64x128xf32>
    tpu.vector_store %arg5[%c0_6, %c0_7], %13 {strides = array<i32>} : memref<64x128xf32, #tpu.memory_space<vmem>>, vector<64x128xf32>,
    return
  }
  func.func @transform_0(%arg0: i32, %arg1: i32) -> (i32, i32) {
    %c0_i32 = arith.constant 0 : i32
    %c0_i32_0 = arith.constant 0 : i32
    return %arg1, %c0_i32 : i32, i32
  }
  func.func @transform_1(%arg0: i32, %arg1: i32) -> (i32, i32) {
    %c0_i32 = arith.constant 0 : i32
    %c0_i32_0 = arith.constant 0 : i32
    return %c0_i32, %arg0 : i32, i32
  }
  func.func @transform_2(%arg0: i32, %arg1: i32) -> (i32, i32) {
    %c0_i32 = arith.constant 0 : i32
    %c0_i32_0 = arith.constant 0 : i32
    return %c0_i32, %arg0 : i32, i32
  }
  func.func @transform_3(%arg0: i32, %arg1: i32) -> (i32, i32) {
    %c0_i32 = arith.constant 0 : i32
    return %arg1, %arg0 : i32, i32
  }
}

</mosaic_0001>

<bundles_post_ra>
// kernel: tpu_custom_call.1
= control target key start
LH: loop header
LB: loop body
LE: loop exit
PB: predicated region body
PF: predicated region fallthrough
CT: control target
= control target key end

     0   :  { %s626_s0 = inlined_call_operand.vmem [shape: f32[64,16], index: 0, kind: input, shape index: {}]   ;;  %s627_s1 = inlined_call_operand.vmem [shape: f32[48,128], index: 1, kind: input, shape index: {}]   ;;  %s628_s2 = inlined_call_operand.vmem [shape: f32[1,128], index: 2, kind: input, shape index: {}]   ;;  %s629_s3 = inlined_call_operand.hbm [shape: f32[64,128], index: 3, kind: output, shape index: {}]  }
   0x1   :  { %v16_v0 = vld [vmem:[%s626_s0 + $0x8] sm:$0xff]  ;;  %v15_v1 = vld [vmem:[%s626_s0] sm:$0xff]  ;;  %v21_v7 = vld [vmem:[%s626_s0 + $0x30] sm:$0xff] }
   0x2   :  { %v20_v2 = vld [vmem:[%s626_s0 + $0x28] sm:$0xff]  ;;  %v337_v3 = vmul.f32 -1.442695, %v16_v0  ;;  %v336_v4 = vmul.f32 -1.442695, %v15_v1  ;;  %v19_v6 = vld [vmem:[%s626_s0 + $0x20] sm:$0xff] }
   0x3   :  { %v341_v5 = vmul.f32 -1.442695, %v20_v2  ;;  %v17_v8 = vld [vmem:[%s626_s0 + $0x10] sm:$0xff]  ;;  %v340_v9 = vmul.f32 -1.442695, %v19_v6  ;;  %v22_v12 = vld [vmem:[%s626_s0 + $0x38] sm:$0xff] }
   0x4   :  { %414 = vpow2.f32 %v337_v3  ;;  %v342_v10 = vmul.f32 -1.442695, %v21_v7  ;;  %v338_v11 = vmul.f32 -1.442695, %v17_v8  ;;  %v18_v13 = vld [vmem:[%s626_s0 + $0x18] sm:$0xff] }
   0x5   :  { %416 = vpow2.f32 %v336_v4 }
   0x6   :  { %8 = vsyncpa [#allocation3], 0  ;;  %418 = vpow2.f32 %v341_v5  ;;  %v343_v14 = vmul.f32 -1.442695, %v22_v12  ;;  %v339_v15 = vmul.f32 -1.442695, %v18_v13 }
   0x7   :  { %420 = vpow2.f32 %v340_v9  ;;  %v169_v32 = vld [vmem:[%s627_s1] sm:$0xff]  ;;  %v170_v33 = vld [vmem:[%s627_s1 + $0x8] sm:$0xff]  ;;  %v171_v38 = vld [vmem:[%s627_s1 + $0x10] sm:$0xff]  ;;  %s470_s8 = smov 16   ;;  %vm151_vm0 = vcmask 130048   ;;  %vm160_vm1 = vcmask 261120  }
   0x8   :  { %422 = vpow2.f32 %v342_v10  ;;  %v391_v34 = vpack.c.bf16 %v170_v33, %v169_v32  ;;  %v172_v39 = vld [vmem:[%s627_s1 + $0x18] sm:$0xff]  ;;  %v173_v48 = vld [vmem:[%s627_s1 + $0x20] sm:$0xff]  ;;  %v174_v49 = vld [vmem:[%s627_s1 + $0x28] sm:$0xff]  ;;  %s471_s1 = smov 32   ;;  %vm182_vm2 = vcmask 392192   ;;  %s472_s15 = smov [#allocation2]  }
   0x9   :  { %424 = vpow2.f32 %v338_v11  ;;  %v395_v42 = vpack.c.bf16 %v172_v39, %v171_v38  ;;  %v399_v50 = vpack.c.bf16 %v174_v49, %v173_v48  ;;  %v344_v33 = vld [vmem:[%s628_s2] ss:$0 sm:$0xff]  ;;  %s325_s16 = sshll.u32 %s472_s15, 4  ;;  %s326_s16 = int_to_ptr.vmem [resolvable:$true] %s325_s16 }
   0xa   :  { %426 = vpow2.f32 %v343_v14  ;;  %392 = vmatprep.subr.bf16.mxu0 %v391_v34  ;;  %403 = vmatprep.subr.bf16.mxu1 %v391_v34  ;;  %s446_s2 = scalar_lea.vmem %s326_s16, 1024  ;;  %p451_p1 = scmp.lt.s32.totalorder %s326_s16, %s326_s16 }
   0xb   :  { %428 = vpow2.f32 %v339_v15  ;;  %394 = vmatpush3.bf16.msra.mxu0 %v391_v34  ;;  %406 = vmatpush3.bf16.msra.mxu1 %v391_v34  ;;  %p447_p0 = scmp.ne.s32.totalorder %s326_s16, %s446_s2  ;;  %p452_p2 = scmp.lt.s32.totalorder %s446_s2, %s446_s2 }
   0xc   :  { %396 = vmatprep.subr.bf16.mxu0 %v395_v42  ;;  %404 = vmatprep.subr.bf16.mxu1 %v395_v42 }
   0xd   :  { %p453_p3 = por %p452_p2, %p451_p1 }
   0xe   :  { %v415_v16 = vpop.eup %414 }
   0xf   :  { %v417_v17 = vpop.eup %416  ;;  %v48_v18 = vadd.f32 1.0, %v415_v16  ;;  %398 = vmatpush3.bf16.msra.mxu0 %v395_v42  ;;  %407 = vmatpush3.bf16.msra.mxu1 %v395_v42  ;;  %p454_p4 = pnand %p453_p3, %p447_p0 }
  0x10   :  { %v419_v19 = vpop.eup %418  ;;  %v47_v20 = vadd.f32 1.0, %v417_v17  ;;  %400 = vmatprep.subr.bf16.mxu0 %v399_v50  ;;  %405 = vmatprep.subr.bf16.mxu1 %v399_v50 }
  0x11   :  { %v421_v21 = vpop.eup %420  ;;  %430 = vrcp.f32 %v48_v18  ;;  %v52_v22 = vadd.f32 1.0, %v419_v19 }
  0x12   :  { %v423_v23 = vpop.eup %422  ;;  %432 = vrcp.f32 %v47_v20  ;;  %v51_v24 = vadd.f32 1.0, %v421_v21 }
  0x13   :  { %v425_v25 = vpop.eup %424  ;;  %434 = vrcp.f32 %v52_v22  ;;  %v53_v26 = vadd.f32 1.0, %v423_v23  ;;  %402 = vmatpush3.bf16.msra.mxu0 %v399_v50  ;;  %408 = vmatpush3.bf16.msra.mxu1 %v399_v50 }
  0x14   :  { %v427_v27 = vpop.eup %426  ;;  %436 = vrcp.f32 %v51_v24  ;;  %v49_v28 = vadd.f32 1.0, %v425_v25 }
  0x15   :  { %v429_v29 = vpop.eup %428  ;;  %438 = vrcp.f32 %v53_v26  ;;  %v54_v30 = vadd.f32 1.0, %v427_v27 }
  0x16   :  { %440 = vrcp.f32 %v49_v28  ;;  %v50_v31 = vadd.f32 1.0, %v429_v29 }
  0x17   :  { %442 = vrcp.f32 %v54_v30 }
  0x18   :  { %444 = vrcp.f32 %v50_v31 }
  0x1b   :  { %v525_v35 = vpop.eup %430 }
  0x1c   :  { %v527_v36 = vpop.eup %432  ;;  %v72_v37 = vmul.f32 %v525_v35, %v525_v35 }
  0x1d   :  { %v537_v40 = vpop.eup %434  ;;  %v71_v41 = vmul.f32 %v527_v36, %v527_v36 }
  0x1e   :  { %v437_v43 = vpop.eup %436  ;;  %97 = vrot.lane.b32.xlu1 %v72_v37, %s470_s8  ;;  %v76_v44 = vmul.f32 %v537_v40, %v537_v40  ;;  %v80_v60 = vmul.f32 %v525_v35, %v72_v37 }
  0x1f   :  { %v544_v45 = vpop.eup %438  ;;  %95 = vrot.lane.b32.xlu0 %v71_v41, %s470_s8  ;;  %v75_v46 = vmul.f32 %v437_v43, %v437_v43  ;;  %v79_v58 = vmul.f32 %v527_v36, %v71_v41 }
  0x20   :  { %v547_v47 = vpop.eup %440  ;;  %v77_v51 = vmul.f32 %v544_v45, %v544_v45  ;;  %v84_v59 = vmul.f32 %v537_v40, %v76_v44 }
  0x21   :  { %v558_v52 = vpop.eup %442  ;;  %v73_v53 = vmul.f32 %v547_v47, %v547_v47  ;;  %v83_v57 = vmul.f32 %v437_v43, %v75_v46 }
  0x22   :  { %105 = vrot.lane.b32.xlu1 %v76_v44, %s470_s8  ;;  %v563_v54 = vpop.eup %444  ;;  %v78_v55 = vmul.f32 %v558_v52, %v558_v52  ;;  %v85_v61 = vmul.f32 %v544_v45, %v77_v51 }
  0x23   :  { %103 = vrot.lane.b32.xlu0 %v75_v46, %s470_s8  ;;  %v74_v56 = vmul.f32 %v563_v54, %v563_v54  ;;  %v81_v62 = vmul.f32 %v547_v47, %v73_v53 }
  0x24   :  { %v86_v63 = vmul.f32 %v558_v52, %v78_v55 }
  0x25   :  { %v82_v0 = vmul.f32 %v563_v54, %v74_v56 }
  0x26   :  { %107 = vrot.lane.b32.xlu1 %v77_v51, %s470_s8 }
  0x27   :  { %99 = vrot.lane.b32.xlu0 %v73_v53, %s470_s8 }
  0x2a   :  { %109 = vrot.lane.b32.xlu1 %v78_v55, %s470_s8 }
  0x2b   :  { %101 = vrot.lane.b32.xlu0 %v74_v56, %s470_s8 }
  0x2e   :  { %135 = vrot.lane.b32.xlu1 %v83_v57, %s471_s1 }
  0x2f   :  { %127 = vrot.lane.b32.xlu0 %v79_v58, %s471_s1 }
  0x32   :  { %137 = vrot.lane.b32.xlu1 %v84_v59, %s471_s1 }
  0x33   :  { %129 = vrot.lane.b32.xlu0 %v80_v60, %s471_s1 }
  0x36   :  { %139 = vrot.lane.b32.xlu1 %v85_v61, %s471_s1 }
  0x37   :  { %131 = vrot.lane.b32.xlu0 %v81_v62, %s471_s1 }
  0x3a   :  { %141 = vrot.lane.b32.xlu1 %v86_v63, %s471_s1 }
  0x3b   :  { %133 = vrot.lane.b32.xlu0 %v82_v0, %s471_s1 }
  0x90   :  { %v98_v1 = vpop.permute.xlu1 %97 }
  0x91   :  { %v96_v2 = vpop.permute.xlu0 %95  ;;  %v153_v17 = vsel %vm151_vm0, %v525_v35, %v98_v1 }
  0x92   :  { %v152_v11 = vsel %vm151_vm0, %v527_v36, %v96_v2 }
  0x94   :  { %v106_v3 = vpop.permute.xlu1 %105 }
  0x95   :  { %v104_v4 = vpop.permute.xlu0 %103  ;;  %v157_v15 = vsel %vm151_vm0, %v537_v40, %v106_v3 }
  0x96   :  { %v156_v9 = vsel %vm151_vm0, %v437_v43, %v104_v4 }
  0x98   :  { %v108_v5 = vpop.permute.xlu1 %107 }
  0x99   :  { %v100_v6 = vpop.permute.xlu0 %99  ;;  %v158_v21 = vsel %vm151_vm0, %v544_v45, %v108_v5 }
  0x9a   :  { %v154_v23 = vsel %vm151_vm0, %v547_v47, %v100_v6 }
  0x9c   :  { %v110_v7 = vpop.permute.xlu1 %109 }
  0x9d   :  { %v102_v8 = vpop.permute.xlu0 %101  ;;  %v159_v27 = vsel %vm151_vm0, %v558_v52, %v110_v7 }
  0x9e   :  { %v155_v29 = vsel %vm151_vm0, %v563_v54, %v102_v8 }
  0xa0   :  { %v136_v10 = vpop.permute.xlu1 %135 }
  0xa1   :  { %v128_v12 = vpop.permute.xlu0 %127  ;;  %v165_v13 = vsel %vm160_vm1, %v156_v9, %v136_v10 }
  0xa2   :  { %v161_v14 = vsel %vm160_vm1, %v152_v11, %v128_v12  ;;  %385 = vmatprep.mubr.msk.f32.mxu1 %vm182_vm2, %v165_v13 }
  0xa3   :  { %379 = vmatprep.mubr.msk.f32.mxu0 %vm182_vm2, %v161_v14 }
  0xa4   :  { %v138_v16 = vpop.permute.xlu1 %137 }
  0xa5   :  { %v166_v18 = vsel %vm160_vm1, %v157_v15, %v138_v16  ;;  %v130_v19 = vpop.permute.xlu0 %129 }
  0xa6   :  { %v162_v20 = vsel %vm160_vm1, %v153_v17, %v130_v19  ;;  %386 = vmatmul.mubr.msk.f32.vlgmr.msra.gmra.mrb[0].mxu1 %vm182_vm2, %v166_v18 }
  0xa7   :  { %380 = vmatmul.mubr.msk.f32.vlgmr.msra.gmra.mrb[0].mxu0 %vm182_vm2, %v162_v20 }
  0xa8   :  { %v140_v22 = vpop.permute.xlu1 %139 }
  0xa9   :  { %v167_v24 = vsel %vm160_vm1, %v158_v21, %v140_v22  ;;  %v132_v25 = vpop.permute.xlu0 %131 }
  0xaa   :  { %v163_v26 = vsel %vm160_vm1, %v154_v23, %v132_v25  ;;  %388 = vmatprep.mubr.msk.f32.mxu1 %vm182_vm2, %v167_v24 }
  0xab   :  { %382 = vmatprep.mubr.msk.f32.mxu0 %vm182_vm2, %v163_v26 }
  0xac   :  { %v142_v28 = vpop.permute.xlu1 %141 }
  0xad   :  { %v168_v30 = vsel %vm160_vm1, %v159_v27, %v142_v28  ;;  %v134_v31 = vpop.permute.xlu0 %133 }
  0xae   :  { %v164_v32 = vsel %vm160_vm1, %v155_v29, %v134_v31  ;;  %389 = vmatmul.mubr.msk.f32.gmra.mrb[2].mxu1 %vm182_vm2, %v168_v30 }
  0xaf   :  { %383 = vmatmul.mubr.msk.f32.gmra.mrb[2].mxu0 %vm182_vm2, %v164_v32 }
 0x179   :  { %v387_v34 = vpop.f32.mrb[0].mxu1 }
 0x17a   :  { %v381_v35 = vpop.f32.mrb[0].mxu0  ;;  %v299_v36 = vadd.f32 %v387_v34, %v344_v33  ;;  %v293_v37 = vpop.f32.mrb[1].mxu1 }
 0x17b   :  { %v279_v38 = vadd.f32 %v381_v35, %v344_v33  ;;  %v273_v39 = vpop.f32.mrb[1].mxu0  ;;  %v294_v40 = vadd.f32 %v344_v33, %v293_v37 }
 0x17c   :  { %317 = vst [vmem:[#allocation2 + $0x28] sm:$0xff] %v299_v36  ;;  %v274_v41 = vadd.f32 %v344_v33, %v273_v39 }
 0x17d   :  { %313 = vst [vmem:[#allocation2 + $0x8] sm:$0xff] %v279_v38  ;;  %316 = vst [vmem:[#allocation2 + $0x20] sm:$0xff] %v294_v40 }
 0x17e   :  { %312 = vst [vmem:[#allocation2] sm:$0xff] %v274_v41 }
 0x181   :  { %v390_v42 = vpop.f32.mrb[2].mxu1 }
 0x182   :  { %v384_v43 = vpop.f32.mrb[2].mxu0  ;;  %v309_v44 = vadd.f32 %v390_v42, %v344_v33  ;;  %v303_v45 = vpop.f32.mrb[3].mxu1 }
 0x183   :  { %v289_v46 = vadd.f32 %v384_v43, %v344_v33  ;;  %v283_v47 = vpop.f32.mrb[3].mxu0  ;;  %v304_v48 = vadd.f32 %v344_v33, %v303_v45 }
 0x184   :  { %319 = vst [vmem:[#allocation2 + $0x38] sm:$0xff] %v309_v44  ;;  %v284_v49 = vadd.f32 %v344_v33, %v283_v47 }
 0x185   :  { %315 = vst [vmem:[#allocation2 + $0x18] sm:$0xff] %v289_v46  ;;  %318 = vst [vmem:[#allocation2 + $0x30] sm:$0xff] %v304_v48 }
 0x186   :  { %314 = vst [vmem:[#allocation2 + $0x10] sm:$0xff] %v284_v49 }
 0x187   :  { %457 = shalt.err (!%p454_p4)
}
 0x188   :  { %s458_s19 = scalar_lea.hbm %s629_s3, 1024 }
 0x189   :  { %p459_p5 = scmp.ne.s32.totalorder %s629_s3, %s458_s19  ;;  %p462_p6 = scmp.lt.u32.totalorder %s458_s19, %s629_s3 }
 0x18b   :  { %p464_p7 = pnand %p462_p6, %p459_p5 }
 0x18d   :  { %467 = shalt.err (!%p464_p7)
}
 0x18e   :  { %s473_s24 = smov 128   ;;  %s474_s25 = smov 8  }
 0x18f   :  { %331 = dma.vmem_to_hbm [thread:$0]  %s326_s16, 1024, %s629_s3, [#allocation3], %s473_s24, %s473_s24, %s474_s25  }
 0x190   :  { %468 = dma.done.wait [#allocation3], 1024  }
 0x191   :  { %469 = vsyncadd [#allocation3], 4294966272 }
 0x192   :  { %335 = vsyncpa [#allocation3], 1 }

</bundles_post_ra>
